<compile_context>
chip_gen: v7x
topology: tpu7x:2x2x1
jax: 0.10.0
libtpu: 0.0.40
codegen_flags: <defaults>
</compile_context>

<pallas_src>
import functools

import jax
import jax.numpy as jnp
from jax.experimental import pallas as pl
from jax.experimental.pallas import tpu as pltpu

BN_EPS = 1e-5
LANE = 128


def _activation(name):
    if name == 'LeakyReLU':
        return lambda x: jnp.where(x >= 0, x, 0.01 * x)
    if name == 'Tanh':
        return jnp.tanh
    if name == 'Sigmoid':
        return lambda x: 1.0 / (1.0 + jnp.exp(-x))
    return lambda x: jnp.maximum(x, 0.0)  # ReLU / default


def _round_up(x, m):
    return (x + m - 1) // m * m


def _vmem_limit_bytes():
    cap = 64 * 1024 * 1024
    try:
        cap = int(getattr(pltpu.get_tpu_info(), "vmem_capacity_bytes", cap))
    except Exception:
        pass
    # ~48 MiB on v7x (64 MiB physical), ~96-100 MiB on v5e/v6e (128 MiB physical)
    return int(min(cap * 3 // 4, 100 * 1024 * 1024))


def _resident_spec(shape):
    """BlockSpec for a grid-invariant operand: constant index_map, single-buffered."""
    imap = lambda i, _nd=len(shape): (0,) * _nd
    try:
        return pl.BlockSpec(shape, imap, pipeline_mode=pl.Buffered(1))
    except (TypeError, AttributeError):
        return pl.BlockSpec(shape, imap)


# ----------------------------------------------------------------------------- kernels

def _partial_stats(h):
    # rows 0/1 = per-feature column sum / sum-of-squares of this tile (f32, VPU/XLU reductions),
    # rows 2-7 zero padding so the store is a full-sublane unmasked (8, F) vst.
    return jnp.concatenate(
        [jnp.sum(h, axis=0, keepdims=True),
         jnp.sum(h * h, axis=0, keepdims=True),
         jnp.zeros((6, h.shape[1]), jnp.float32)], axis=0)


def _linear_stats_kernel(x_ref, w_ref, h_ref, stats_ref):
    # Pre-BN Linear (bias dropped - exact no-op under train-mode BN) + per-tile stats.
    # Padded rows of x are zero, so they contribute exactly zero to the stats (no mask needed).
    h = jnp.dot(x_ref[...], w_ref[...], preferred_element_type=jnp.float32)
    h_ref[...] = h.astype(h_ref.dtype)
    stats_ref[0] = _partial_stats(h)


def _affine_act_linear_stats_kernel(h_ref, ss_ref, w_ref, out_ref, stats_ref,
                                    *, mask_rows, tile_n, n_real, mm_dtype, act):
    # Fused BN affine (precomputed scale/shift) + activation + next Linear + per-tile stats.
    ss = ss_ref[...]                                   # (8, Fin) f32: rows 0/1 = scale/shift
    a = act(h_ref[...] * ss[0:1, :] + ss[1:2, :])      # bf16 * f32 -> f32, single FMA pass
    out = jnp.dot(a.astype(mm_dtype), w_ref[...], preferred_element_type=jnp.float32)
    out_ref[...] = out.astype(out_ref.dtype)
    om = out
    if mask_rows:                                      # exclude zero-padded batch rows
        rows = (jax.lax.broadcasted_iota(jnp.int32, (tile_n, 1), 0)
                + pl.program_id(0) * tile_n)
        om = jnp.where(rows < n_real, out, 0.0)
    stats_ref[0] = _partial_stats(om)


def _affine_decoder_kernel(zpre_ref, ss_ref, wd0_ref, bdh_ref, wdm_ref, wdo_ref, bdo_ref,
                           z_ref, xhat_ref, *, n_layers, mm_dtype, act):
    ss = ss_ref[...]
    z = zpre_ref[...] * ss[0:1, :] + ss[1:2, :]        # latent BatchNorm (no activation), f32
    z_ref[...] = z.astype(z_ref.dtype)

    bdh = bdh_ref[...]                                 # (n_layers + 1, H) packed decoder biases
    d = act(jnp.dot(z.astype(mm_dtype), wd0_ref[...],
                    preferred_element_type=jnp.float32) + bdh[0:1, :])
    for l in range(n_layers):
        d = act(jnp.dot(d.astype(mm_dtype), wdm_ref[l],
                        preferred_element_type=jnp.float32) + bdh[l + 1:l + 2, :])
    xhat = jnp.dot(d.astype(mm_dtype), wdo_ref[...],
                   preferred_element_type=jnp.float32) + bdo_ref[...]
    xhat_ref[...] = xhat.astype(xhat_ref.dtype)


# ----------------------------------------------------------------------------- params

def init_params(key, input_dim, hidden_dim, latent_dim, n_layers):
    """Deterministic PyTorch-style init. Linear weights stored as (in, out)."""
    params = []

    def linear(key, fan_in, fan_out):
        k1, k2 = jax.random.split(key)
        bound = 1.0 / jnp.sqrt(float(fan_in))
        W = jax.random.uniform(k1, (fan_in, fan_out), jnp.float32, -bound, bound)
        b = jax.random.uniform(k2, (1, fan_out), jnp.float32, -bound, bound)
        return W, b

    def bn(dim):
        return jnp.ones((1, dim), jnp.float32), jnp.zeros((1, dim), jnp.float32)

    keys = jax.random.split(key, 2 * n_layers + 3)
    ki = iter(keys)

    dims_in = [input_dim] + [hidden_dim] * (n_layers - 1)
    for d_in in dims_in:
        W, b = linear(next(ki), d_in, hidden_dim)
        g, beta = bn(hidden_dim)
        params += [W, b, g, beta]
    W, b = linear(next(ki), hidden_dim, latent_dim)
    g, beta = bn(latent_dim)
    params += [W, b, g, beta]
    W, b = linear(next(ki), latent_dim, hidden_dim)
    params += [W, b]
    for _ in range(n_layers):
        W, b = linear(next(ki), hidden_dim, hidden_dim)
        params += [W, b]
    W, b = linear(next(ki), hidden_dim, input_dim)
    params += [W, b]
    return params


# ----------------------------------------------------------------------------- wrapper

@functools.partial(jax.jit, static_argnames=(
    "input_dim", "hidden_dim", "latent_dim", "n_layers", "activation",
    "mm_dtype", "tile_n_target"))
def autoencoder_forward(x, params, *, input_dim, hidden_dim, latent_dim, n_layers,
                        activation='ReLU', mm_dtype='bfloat16', tile_n_target=2048):
    """x: (batch, n_comps, input_dim) -> (z: (batch, n_comps, latent_dim),
                                          xhat: (batch, n_comps, input_dim))"""
    B, T, F = x.shape
    assert F == input_dim and n_layers >= 1
    N = B * T
    act = _activation(activation)
    is_trans = activation in ('Tanh', 'Sigmoid')
    mmdt = jnp.dtype(mm_dtype)
    itemsz = mmdt.itemsize

    # Lane-dense feature widths (multiples of 128) for MXU occupancy and unmasked stores.
    in_pad = _round_up(input_dim, LANE)
    hid_pad = _round_up(hidden_dim, LANE)
    lat_pad = _round_up(latent_dim, LANE)
    dec_w_elems = lat_pad * hid_pad + n_layers * hid_pad * hid_pad + hid_pad * in_pad

    # --- row-tile sizing against the VMEM budget (weights single-buffered, tiles double) ---
    vmem_limit = _vmem_limit_bytes()
    budget = vmem_limit - (8 << 20)                      # headroom for compiler scratch
    enc_w_bytes = (max(in_pad, hid_pad) * hid_pad + hid_pad * lat_pad) * itemsz \
                  + 3 * 8 * max(hid_pad, lat_pad) * 4
    dec_w_bytes = dec_w_elems * itemsz + ((n_layers + 1) * hid_pad + in_pad + 8 * lat_pad) * 4
    # TODO(synk): if dec_w_bytes alone exceeds the VMEM budget (very large hidden_dim /
    #             n_layers on v7x), split the fused decoder into per-layer pallas_calls.
    w_bytes = max(enc_w_bytes, dec_w_bytes)
    max_f = max(in_pad, hid_pad, lat_pad)
    enc_row_bytes = 4 * itemsz * max_f + 20 * max_f      # dbl-buffered bf16 I/O + f32 temps
    dec_row_bytes = 2 * itemsz * lat_pad + 8 * (lat_pad + in_pad) + 20 * hid_pad
    row_bytes = max(enc_row_bytes, dec_row_bytes)
    tile_cap = max(8, (budget - w_bytes) // row_bytes)

    row_align = 16 if _round_up(N, 8) >= 16 else 8       # bf16 sublane packing when possible
    tile_n = min(int(tile_n_target), int(tile_cap), _round_up(N, row_align))
    tile_n = max(row_align, tile_n // row_align * row_align)
    n_pad = _round_up(N, tile_n)
    n_tiles = n_pad // tile_n
    grid = (n_tiles,)
    mask_rows = (n_pad != N)

    def pad2(a, rows, cols, dtype=jnp.float32):
        a = a.astype(dtype)
        return jnp.pad(a, ((0, rows - a.shape[0]), (0, cols - a.shape[1])))

    x_p = pad2(x.reshape(N, F), n_pad, in_pad, mmdt)      # bf16 input tiles

    # -------- unpack the PyTorch-layout param list; pack / pad / cast for the kernels ------
    idx = 0

    def take(n):
        nonlocal idx
        out = params[idx:idx + n]
        idx += n
        return out

    enc_W, enc_g, enc_b = [], [], []
    dims_in = [in_pad] + [hid_pad] * (n_layers - 1)
    for d_in in dims_in:
        W, _bias, g, beta = take(4)              # pre-BN Linear bias dropped (no-op under BN)
        enc_W.append(pad2(W, d_in, hid_pad, mmdt))
        enc_g.append(pad2(g, 1, hid_pad))
        enc_b.append(pad2(beta, 1, hid_pad))
    W, _bias, g, beta = take(4)
    W_lat = pad2(W, hid_pad, lat_pad, mmdt)
    g_lat = pad2(g, 1, lat_pad)
    b_lat = pad2(beta, 1, lat_pad)

    W, b = take(2)
    Wd0 = pad2(W, lat_pad, hid_pad, mmdt)
    bdh = [pad2(b, 1, hid_pad)]
    Wdm = []
    for _ in range(n_layers):
        W, b = take(2)
        Wdm.append(pad2(W, hid_pad, hid_pad, mmdt))
        bdh.append(pad2(b, 1, hid_pad))
    W, b = take(2)
    Wdo = pad2(W, hid_pad, in_pad, mmdt)
    bdo = pad2(b, 1, in_pad)
    Wdm = jnp.stack(Wdm, axis=0)                 # (n_layers, hid_pad, hid_pad)
    bdh = jnp.concatenate(bdh, axis=0)           # (n_layers + 1, hid_pad)

    par_params = pltpu.CompilerParams(dimension_semantics=("parallel",),
                                      vmem_limit_bytes=vmem_limit)

    def cost(fin, fout, n_transcendental):
        flops = 2 * n_pad * fin * fout + 8 * n_pad * fout        # matmul + affine + stats
        bytes_accessed = (n_pad * (fin + fout) * itemsz + fin * fout * itemsz
                          + n_tiles * 8 * fout * 4 + 8 * fin * 4)
        return pl.CostEstimate(flops=int(flops), transcendentals=int(n_transcendental),
                               bytes_accessed=int(bytes_accessed))

    inv_n = 1.0 / N

    def bn_affine(partials, gamma, beta):
        """Reduce per-tile partial stats (n_tiles, 8, F) -> (8, F) fused BN scale/shift."""
        s = jnp.sum(partials, axis=0)                    # (8, F) f32
        mean = s[0] * inv_n
        # TODO(synk): E[x^2]-E[x]^2 can cancel catastrophically when |mean| >> std at huge N;
        #             switch to shifted / Welford-style sums if inputs are not pre-normalized.
        var = jnp.maximum(s[1] * inv_n - mean * mean, 0.0)
        scale = gamma[0] * jax.lax.rsqrt(var + BN_EPS)
        shift = beta[0] - mean * scale
        return jnp.concatenate(
            [scale[None], shift[None], jnp.zeros((6, scale.shape[0]), jnp.float32)], axis=0)

    # -------- encoder block 0: Linear(in -> hid) + per-tile batch-stat partials --------
    h, p_stats = pl.pallas_call(
        _linear_stats_kernel,
        grid=grid,
        in_specs=[pl.BlockSpec((tile_n, in_pad), lambda i: (i, 0)),
                  _resident_spec((in_pad, hid_pad))],
        out_specs=(pl.BlockSpec((tile_n, hid_pad), lambda i: (i, 0)),
                   pl.BlockSpec((1, 8, hid_pad), lambda i: (i, 0, 0))),
        out_shape=(jax.ShapeDtypeStruct((n_pad, hid_pad), mmdt),
                   jax.ShapeDtypeStruct((n_tiles, 8, hid_pad), jnp.float32)),
        compiler_params=par_params,
        cost_estimate=cost(in_pad, hid_pad, 0),
    )(x_p, enc_W[0])
    ss = bn_affine(p_stats, enc_g[0], enc_b[0])

    # -------- encoder blocks 1..n-1 and latent projection:
    #          BN affine (precomputed scale/shift) -> act -> Linear -> per-tile stats --------
    def affine_act_linear(h_in, ss_in, W_in, fout):
        fin = h_in.shape[1]
        return pl.pallas_call(
            functools.partial(_affine_act_linear_stats_kernel, mask_rows=mask_rows,
                              tile_n=tile_n, n_real=N, mm_dtype=mmdt, act=act),
            grid=grid,
            in_specs=[pl.BlockSpec((tile_n, fin), lambda i: (i, 0)),
                      _resident_spec((8, fin)),
                      _resident_spec((fin, fout))],
            out_specs=(pl.BlockSpec((tile_n, fout), lambda i: (i, 0)),
                       pl.BlockSpec((1, 8, fout), lambda i: (i, 0, 0))),
            out_shape=(jax.ShapeDtypeStruct((n_pad, fout), mmdt),
                       jax.ShapeDtypeStruct((n_tiles, 8, fout), jnp.float32)),
            compiler_params=par_params,
            cost_estimate=cost(fin, fout, n_pad * fin if is_trans else 0),
        )(h_in, ss_in, W_in)

    for k in range(1, n_layers):
        h, p_stats = affine_act_linear(h, ss, enc_W[k], hid_pad)
        ss = bn_affine(p_stats, enc_g[k], enc_b[k])
    z_pre, p_stats = affine_act_linear(h, ss, W_lat, lat_pad)
    ss_lat = bn_affine(p_stats, g_lat, b_lat)

    # -------- latent BN affine + full decoder (purely row-wise -> 'parallel' N axis) --------
    dec_cost = pl.CostEstimate(
        flops=int(2 * n_pad * dec_w_elems + 4 * n_pad * lat_pad),
        transcendentals=int(n_pad * hid_pad * (n_layers + 1)) if is_trans else 0,
        bytes_accessed=int(n_pad * lat_pad * itemsz + n_pad * (lat_pad + in_pad) * 4
                           + dec_w_elems * itemsz
                           + ((n_layers + 2) * hid_pad + 8 * lat_pad) * 4))
    z_p, xhat_p = pl.pallas_call(
        functools.partial(_affine_decoder_kernel, n_layers=n_layers, mm_dtype=mmdt, act=act),
        grid=grid,
        in_specs=[pl.BlockSpec((tile_n, lat_pad), lambda i: (i, 0)),
                  _resident_spec((8, lat_pad)),
                  _resident_spec((lat_pad, hid_pad)),
                  _resident_spec((n_layers + 1, hid_pad)),
                  _resident_spec((n_layers, hid_pad, hid_pad)),
                  _resident_spec((hid_pad, in_pad)),
                  _resident_spec((1, in_pad))],
        out_specs=(pl.BlockSpec((tile_n, lat_pad), lambda i: (i, 0)),
                   pl.BlockSpec((tile_n, in_pad), lambda i: (i, 0))),
        out_shape=(jax.ShapeDtypeStruct((n_pad, lat_pad), jnp.float32),
                   jax.ShapeDtypeStruct((n_pad, in_pad), jnp.float32)),
        compiler_params=par_params,
        cost_estimate=dec_cost,
    )(z_pre, ss_lat, Wd0, bdh, Wdm, Wdo, bdo)

    z = z_p[:N, :latent_dim].reshape(B, T, latent_dim)
    xhat = xhat_p[:N, :input_dim].reshape(B, T, input_dim)
    return z, xhat


# ----------------------------------------------------------------------------- reference

def _batchnorm_train(h, gamma, beta):
    mean = jnp.mean(h, axis=0, keepdims=True)
    var = jnp.mean((h - mean) * (h - mean), axis=0, keepdims=True)
    return (h - mean) * jax.lax.rsqrt(var + BN_EPS) * gamma + beta


def _reference_forward(x, params, input_dim, hidden_dim, latent_dim, n_layers,
                       activation='ReLU', mm_dtype='bfloat16'):
    """Pure-JAX reference mirroring the PyTorch module (training-mode BatchNorm) with the
    same matmul operand precision as the kernel (bf16 operands, f32 accumulation)."""
    act = _activation(activation)
    mmdt = jnp.dtype(mm_dtype)

    def mm(a, w):
        return jnp.dot(a.astype(mmdt), w.astype(mmdt), preferred_element_type=jnp.float32)

    B, T, F = x.shape
    h = x.reshape(-1, F).astype(jnp.float32)
    idx = 0

    def take(n):
        nonlocal idx
        out = params[idx:idx + n]
        idx += n
        return out

    for _ in range(n_layers):
        W, b, g, beta = take(4)
        h = act(_batchnorm_train(mm(h, W) + b, g, beta))
    W, b, g, beta = take(4)
    z = _batchnorm_train(mm(h, W) + b, g, beta)
    W, b = take(2)
    d = act(mm(z, W) + b)
    for _ in range(n_layers):
        W, b = take(2)
        d = act(mm(d, W) + b)
    W, b = take(2)
    xhat = mm(d, W) + b
    return z.reshape(B, T, latent_dim), xhat.reshape(B, T, input_dim)


if __name__ == "__main__":
    # Small, module-consistent shapes: x is (batch_size, n_comps, input_dim)
    batch_size, n_comps = 2, 8
    input_dim, hidden_dim, latent_dim, n_layers = 16, 32, 8, 2

    key = jax.random.PRNGKey(0)
    k_x, k_p = jax.random.split(key)
    x = jax.random.normal(k_x, (batch_size, n_comps, input_dim), jnp.float32)
    params = init_params(k_p, input_dim, hidden_dim, latent_dim, n_layers)

    z, xhat = autoencoder_forward(
        x, params, input_dim=input_dim, hidden_dim=hidden_dim,
        latent_dim=latent_dim, n_layers=n_layers, activation='ReLU')
    jax.block_until_ready((z, xhat))

    z_ref, xhat_ref = _reference_forward(
        x, params, input_dim, hidden_dim, latent_dim, n_layers, 'ReLU',
        mm_dtype='bfloat16')

    assert z.shape == (batch_size, n_comps, latent_dim)
    assert xhat.shape == (batch_size, n_comps, input_dim)
    # Tolerance sits at the bf16 noise floor: both kernel and reference use bf16 matmul
    # operands with f32 accumulation, and the kernel additionally stores inter-layer
    # activations in bf16 (BN stats / rsqrt are f32 in both).
    assert jnp.allclose(z, z_ref, rtol=2e-2, atol=2e-2), float(jnp.max(jnp.abs(z - z_ref)))
    assert jnp.allclose(xhat, xhat_ref, rtol=2e-2, atol=2e-2), float(jnp.max(jnp.abs(xhat - xhat_ref)))

    print("KERNEL_OK")
</pallas_src>

<mosaic_0001>
module attributes {stable_mosaic.version = 11 : i64} {
  func.func @_linear_stats_kernel(%arg0: i32, %arg1: memref<16x128xbf16, #tpu.memory_space<vmem>>, %arg2: memref<128x128xbf16, #tpu.memory_space<vmem>>, %arg3: memref<16x128xbf16, #tpu.memory_space<vmem>>, %arg4: memref<1x8x128xf32, #tpu.memory_space<vmem>>) attributes {dimension_semantics = [#tpu.dimension_semantics<parallel>], iteration_bounds = array<i64: 1>, scalar_prefetch = 0 : i64, scratch_operands = 0 : i64, tpu.core_type = #tpu.core_type<tc>, window_params = [{transform_indices = @transform_0, window_bounds = array<i64: 16, 128>}, {pipeline_mode = #tpu.pipeline_mode<synchronous>, transform_indices = @transform_1, window_bounds = array<i64: 128, 128>}, {transform_indices = @transform_2, window_bounds = array<i64: 16, 128>}, {transform_indices = @transform_3, window_bounds = array<i64: 1, 8, 128>}]} {
    %c0 = arith.constant 0 : index
    %c0_0 = arith.constant 0 : index
    %0 = vector.load %arg1[%c0, %c0_0] : memref<16x128xbf16, #tpu.memory_space<vmem>>, vector<16x128xbf16>
    %c0_1 = arith.constant 0 : index
    %c0_2 = arith.constant 0 : index
    %1 = vector.load %arg2[%c0_1, %c0_2] : memref<128x128xbf16, #tpu.memory_space<vmem>>, vector<128x128xbf16>
    %cst = arith.constant dense<0.000000e+00> : vector<16x128xf32>
    %2 = tpu.matmul %0, %1, %cst {dimension_numbers = #tpu.dot_dimension_numbers<[1], [0], [0], [1], [0, 0, 1, 1], [], []>} : vector<16x128xbf16>, vector<128x128xbf16>, vector<16x128xf32> -> vector<16x128xf32>
    %3 = arith.truncf %2 : vector<16x128xf32> to vector<16x128xbf16>
    %c0_3 = arith.constant 0 : index
    %c0_4 = arith.constant 0 : index
    %4 = vector.load %arg3[%c0_3, %c0_4] : memref<16x128xbf16, #tpu.memory_space<vmem>>, vector<16x128xbf16>
    tpu.vector_store %arg3[%c0_3, %c0_4], %3 {strides = array<i32>} : memref<16x128xbf16, #tpu.memory_space<vmem>>, vector<16x128xbf16>,
    %cst_5 = arith.constant dense<0.000000e+00> : vector<128xf32>
    %5 = vector.multi_reduction <add>, %2, %cst_5 [0] : vector<16x128xf32> to vector<128xf32>
    %6 = vector.shape_cast %5 : vector<128xf32> to vector<1x128xf32>
    %7 = arith.mulf %2, %2 : vector<16x128xf32>
    %cst_6 = arith.constant dense<0.000000e+00> : vector<128xf32>
    %8 = vector.multi_reduction <add>, %7, %cst_6 [0] : vector<16x128xf32> to vector<128xf32>
    %9 = vector.shape_cast %8 : vector<128xf32> to vector<1x128xf32>
    %cst_7 = arith.constant 0.000000e+00 : f32
    %10 = vector.broadcast %cst_7 : f32 to vector<6x128xf32>
    %11 = tpu.concatenate %6, %9, %10 in 0 : vector<1x128xf32>, vector<1x128xf32>, vector<6x128xf32> -> vector<8x128xf32>
    %c0_8 = arith.constant 0 : index
    %c0_9 = arith.constant 0 : index
    %c0_10 = arith.constant 0 : index
    %12 = vector.load %arg4[%c0_8, %c0_9, %c0_10] : memref<1x8x128xf32, #tpu.memory_space<vmem>>, vector<1x8x128xf32>
    %13 = vector.shape_cast %12 : vector<1x8x128xf32> to vector<8x128xf32>
    %14 = vector.shape_cast %11 : vector<8x128xf32> to vector<1x8x128xf32>
    tpu.vector_store %arg4[%c0_8, %c0_9, %c0_10], %14 {strides = array<i32>} : memref<1x8x128xf32, #tpu.memory_space<vmem>>, vector<1x8x128xf32>,
    return
  }
  func.func @transform_0(%arg0: i32) -> (i32, i32) {
    %c0_i32 = arith.constant 0 : i32
    %c0_i32_0 = arith.constant 0 : i32
    return %arg0, %c0_i32 : i32, i32
  }
  func.func @transform_1(%arg0: i32) -> (i32, i32) {
    %c0_i32 = arith.constant 0 : i32
    %c0_i32_0 = arith.constant 0 : i32
    %c0_i32_1 = arith.constant 0 : i32
    return %c0_i32, %c0_i32_0 : i32, i32
  }
  func.func @transform_2(%arg0: i32) -> (i32, i32) {
    %c0_i32 = arith.constant 0 : i32
    %c0_i32_0 = arith.constant 0 : i32
    return %arg0, %c0_i32 : i32, i32
  }
  func.func @transform_3(%arg0: i32) -> (i32, i32, i32) {
    %c0_i32 = arith.constant 0 : i32
    %c0_i32_0 = arith.constant 0 : i32
    %c0_i32_1 = arith.constant 0 : i32
    return %arg0, %c0_i32, %c0_i32_0 : i32, i32, i32
  }
}

module attributes {stable_mosaic.version = 11 : i64} {
  func.func @_affine_act_linear_stats_kernel(%arg0: i32, %arg1: memref<16x128xbf16, #tpu.memory_space<vmem>>, %arg2: memref<8x128xf32, #tpu.memory_space<vmem>>, %arg3: memref<128x128xbf16, #tpu.memory_space<vmem>>, %arg4: memref<16x128xbf16, #tpu.memory_space<vmem>>, %arg5: memref<1x8x128xf32, #tpu.memory_space<vmem>>) attributes {dimension_semantics = [#tpu.dimension_semantics<parallel>], iteration_bounds = array<i64: 1>, scalar_prefetch = 0 : i64, scratch_operands = 0 : i64, tpu.core_type = #tpu.core_type<tc>, window_params = [{transform_indices = @transform_0, window_bounds = array<i64: 16, 128>}, {pipeline_mode = #tpu.pipeline_mode<synchronous>, transform_indices = @transform_1, window_bounds = array<i64: 8, 128>}, {pipeline_mode = #tpu.pipeline_mode<synchronous>, transform_indices = @transform_2, window_bounds = array<i64: 128, 128>}, {transform_indices = @transform_3, window_bounds = array<i64: 16, 128>}, {transform_indices = @transform_4, window_bounds = array<i64: 1, 8, 128>}]} {
    %c0 = arith.constant 0 : index
    %c0_0 = arith.constant 0 : index
    %0 = vector.load %arg2[%c0, %c0_0] : memref<8x128xf32, #tpu.memory_space<vmem>>, vector<8x128xf32>
    %c0_1 = arith.constant 0 : index
    %c0_2 = arith.constant 0 : index
    %1 = vector.load %arg1[%c0_1, %c0_2] : memref<16x128xbf16, #tpu.memory_space<vmem>>, vector<16x128xbf16>
    %2 = vector.extract_strided_slice %0 {offsets = [0, 0], sizes = [1, 128], strides = [1, 1]} : vector<8x128xf32> to vector<1x128xf32>
    %3 = arith.extf %1 : vector<16x128xbf16> to vector<16x128xf32>
    %4 = vector.broadcast %2 : vector<1x128xf32> to vector<16x128xf32>
    %5 = arith.mulf %3, %4 : vector<16x128xf32>
    %6 = vector.extract_strided_slice %0 {offsets = [1, 0], sizes = [1, 128], strides = [1, 1]} : vector<8x128xf32> to vector<1x128xf32>
    %7 = vector.broadcast %6 : vector<1x128xf32> to vector<16x128xf32>
    %8 = arith.addf %5, %7 : vector<16x128xf32>
    %cst = arith.constant 0.000000e+00 : f32
    %9 = vector.broadcast %cst : f32 to vector<16x128xf32>
    %10 = arith.maximumf %8, %9 : vector<16x128xf32>
    %11 = arith.truncf %10 : vector<16x128xf32> to vector<16x128xbf16>
    %c0_3 = arith.constant 0 : index
    %c0_4 = arith.constant 0 : index
    %12 = vector.load %arg3[%c0_3, %c0_4] : memref<128x128xbf16, #tpu.memory_space<vmem>>, vector<128x128xbf16>
    %cst_5 = arith.constant dense<0.000000e+00> : vector<16x128xf32>
    %13 = tpu.matmul %11, %12, %cst_5 {dimension_numbers = #tpu.dot_dimension_numbers<[1], [0], [0], [1], [0, 0, 1, 1], [], []>} : vector<16x128xbf16>, vector<128x128xbf16>, vector<16x128xf32> -> vector<16x128xf32>
    %14 = arith.truncf %13 : vector<16x128xf32> to vector<16x128xbf16>
    %c0_6 = arith.constant 0 : index
    %c0_7 = arith.constant 0 : index
    %15 = vector.load %arg4[%c0_6, %c0_7] : memref<16x128xbf16, #tpu.memory_space<vmem>>, vector<16x128xbf16>
    tpu.vector_store %arg4[%c0_6, %c0_7], %14 {strides = array<i32>} : memref<16x128xbf16, #tpu.memory_space<vmem>>, vector<16x128xbf16>,
    %cst_8 = arith.constant dense<0.000000e+00> : vector<128xf32>
    %16 = vector.multi_reduction <add>, %13, %cst_8 [0] : vector<16x128xf32> to vector<128xf32>
    %17 = vector.shape_cast %16 : vector<128xf32> to vector<1x128xf32>
    %18 = arith.mulf %13, %13 : vector<16x128xf32>
    %cst_9 = arith.constant dense<0.000000e+00> : vector<128xf32>
    %19 = vector.multi_reduction <add>, %18, %cst_9 [0] : vector<16x128xf32> to vector<128xf32>
    %20 = vector.shape_cast %19 : vector<128xf32> to vector<1x128xf32>
    %cst_10 = arith.constant 0.000000e+00 : f32
    %21 = vector.broadcast %cst_10 : f32 to vector<6x128xf32>
    %22 = tpu.concatenate %17, %20, %21 in 0 : vector<1x128xf32>, vector<1x128xf32>, vector<6x128xf32> -> vector<8x128xf32>
    %c0_11 = arith.constant 0 : index
    %c0_12 = arith.constant 0 : index
    %c0_13 = arith.constant 0 : index
    %23 = vector.load %arg5[%c0_11, %c0_12, %c0_13] : memref<1x8x128xf32, #tpu.memory_space<vmem>>, vector<1x8x128xf32>
    %24 = vector.shape_cast %23 : vector<1x8x128xf32> to vector<8x128xf32>
    %25 = vector.shape_cast %22 : vector<8x128xf32> to vector<1x8x128xf32>
    tpu.vector_store %arg5[%c0_11, %c0_12, %c0_13], %25 {strides = array<i32>} : memref<1x8x128xf32, #tpu.memory_space<vmem>>, vector<1x8x128xf32>,
    return
  }
  func.func @transform_0(%arg0: i32) -> (i32, i32) {
    %c0_i32 = arith.constant 0 : i32
    %c0_i32_0 = arith.constant 0 : i32
    return %arg0, %c0_i32 : i32, i32
  }
  func.func @transform_1(%arg0: i32) -> (i32, i32) {
    %c0_i32 = arith.constant 0 : i32
    %c0_i32_0 = arith.constant 0 : i32
    %c0_i32_1 = arith.constant 0 : i32
    return %c0_i32, %c0_i32_0 : i32, i32
  }
  func.func @transform_2(%arg0: i32) -> (i32, i32) {
    %c0_i32 = arith.constant 0 : i32
    %c0_i32_0 = arith.constant 0 : i32
    %c0_i32_1 = arith.constant 0 : i32
    return %c0_i32, %c0_i32_0 : i32, i32
  }
  func.func @transform_3(%arg0: i32) -> (i32, i32) {
    %c0_i32 = arith.constant 0 : i32
    %c0_i32_0 = arith.constant 0 : i32
    return %arg0, %c0_i32 : i32, i32
  }
  func.func @transform_4(%arg0: i32) -> (i32, i32, i32) {
    %c0_i32 = arith.constant 0 : i32
    %c0_i32_0 = arith.constant 0 : i32
    %c0_i32_1 = arith.constant 0 : i32
    return %arg0, %c0_i32, %c0_i32_0 : i32, i32, i32
  }
}

module attributes {stable_mosaic.version = 11 : i64} {
  func.func @_affine_decoder_kernel(%arg0: i32, %arg1: memref<16x128xbf16, #tpu.memory_space<vmem>>, %arg2: memref<8x128xf32, #tpu.memory_space<vmem>>, %arg3: memref<128x128xbf16, #tpu.memory_space<vmem>>, %arg4: memref<3x128xf32, #tpu.memory_space<vmem>>, %arg5: memref<2x128x128xbf16, #tpu.memory_space<vmem>>, %arg6: memref<128x128xbf16, #tpu.memory_space<vmem>>, %arg7: memref<1x128xf32, #tpu.memory_space<vmem>>, %arg8: memref<16x128xf32, #tpu.memory_space<vmem>>, %arg9: memref<16x128xf32, #tpu.memory_space<vmem>>) attributes {dimension_semantics = [#tpu.dimension_semantics<parallel>], iteration_bounds = array<i64: 1>, scalar_prefetch = 0 : i64, scratch_operands = 0 : i64, tpu.core_type = #tpu.core_type<tc>, window_params = [{transform_indices = @transform_0, window_bounds = array<i64: 16, 128>}, {pipeline_mode = #tpu.pipeline_mode<synchronous>, transform_indices = @transform_1, window_bounds = array<i64: 8, 128>}, {pipeline_mode = #tpu.pipeline_mode<synchronous>, transform_indices = @transform_2, window_bounds = array<i64: 128, 128>}, {pipeline_mode = #tpu.pipeline_mode<synchronous>, transform_indices = @transform_3, window_bounds = array<i64: 3, 128>}, {pipeline_mode = #tpu.pipeline_mode<synchronous>, transform_indices = @transform_4, window_bounds = array<i64: 2, 128, 128>}, {pipeline_mode = #tpu.pipeline_mode<synchronous>, transform_indices = @transform_5, window_bounds = array<i64: 128, 128>}, {pipeline_mode = #tpu.pipeline_mode<synchronous>, transform_indices = @transform_6, window_bounds = array<i64: 1, 128>}, {transform_indices = @transform_7, window_bounds = array<i64: 16, 128>}, {transform_indices = @transform_8, window_bounds = array<i64: 16, 128>}]} {
    %c0 = arith.constant 0 : index
    %c0_0 = arith.constant 0 : index
    %0 = vector.load %arg2[%c0, %c0_0] : memref<8x128xf32, #tpu.memory_space<vmem>>, vector<8x128xf32>
    %c0_1 = arith.constant 0 : index
    %c0_2 = arith.constant 0 : index
    %1 = vector.load %arg1[%c0_1, %c0_2] : memref<16x128xbf16, #tpu.memory_space<vmem>>, vector<16x128xbf16>
    %2 = vector.extract_strided_slice %0 {offsets = [0, 0], sizes = [1, 128], strides = [1, 1]} : vector<8x128xf32> to vector<1x128xf32>
    %3 = arith.extf %1 : vector<16x128xbf16> to vector<16x128xf32>
    %4 = vector.broadcast %2 : vector<1x128xf32> to vector<16x128xf32>
    %5 = arith.mulf %3, %4 : vector<16x128xf32>
    %6 = vector.extract_strided_slice %0 {offsets = [1, 0], sizes = [1, 128], strides = [1, 1]} : vector<8x128xf32> to vector<1x128xf32>
    %7 = vector.broadcast %6 : vector<1x128xf32> to vector<16x128xf32>
    %8 = arith.addf %5, %7 : vector<16x128xf32>
    %c0_3 = arith.constant 0 : index
    %c0_4 = arith.constant 0 : index
    %9 = vector.load %arg8[%c0_3, %c0_4] : memref<16x128xf32, #tpu.memory_space<vmem>>, vector<16x128xf32>
    tpu.vector_store %arg8[%c0_3, %c0_4], %8 {strides = array<i32>} : memref<16x128xf32, #tpu.memory_space<vmem>>, vector<16x128xf32>,
    %c0_5 = arith.constant 0 : index
    %c0_6 = arith.constant 0 : index
    %10 = vector.load %arg4[%c0_5, %c0_6] : memref<3x128xf32, #tpu.memory_space<vmem>>, vector<3x128xf32>
    %11 = arith.truncf %8 : vector<16x128xf32> to vector<16x128xbf16>
    %c0_7 = arith.constant 0 : index
    %c0_8 = arith.constant 0 : index
    %12 = vector.load %arg3[%c0_7, %c0_8] : memref<128x128xbf16, #tpu.memory_space<vmem>>, vector<128x128xbf16>
    %cst = arith.constant dense<0.000000e+00> : vector<16x128xf32>
    %13 = tpu.matmul %11, %12, %cst {dimension_numbers = #tpu.dot_dimension_numbers<[1], [0], [0], [1], [0, 0, 1, 1], [], []>} : vector<16x128xbf16>, vector<128x128xbf16>, vector<16x128xf32> -> vector<16x128xf32>
    %14 = vector.extract_strided_slice %10 {offsets = [0, 0], sizes = [1, 128], strides = [1, 1]} : vector<3x128xf32> to vector<1x128xf32>
    %15 = vector.broadcast %14 : vector<1x128xf32> to vector<16x128xf32>
    %16 = arith.addf %13, %15 : vector<16x128xf32>
    %cst_9 = arith.constant 0.000000e+00 : f32
    %17 = vector.broadcast %cst_9 : f32 to vector<16x128xf32>
    %18 = arith.maximumf %16, %17 : vector<16x128xf32>
    %19 = arith.truncf %18 : vector<16x128xf32> to vector<16x128xbf16>
    %c0_10 = arith.constant 0 : index
    %c0_11 = arith.constant 0 : index
    %c0_12 = arith.constant 0 : index
    %20 = vector.load %arg5[%c0_10, %c0_11, %c0_12] : memref<2x128x128xbf16, #tpu.memory_space<vmem>>, vector<1x128x128xbf16>
    %21 = vector.shape_cast %20 : vector<1x128x128xbf16> to vector<128x128xbf16>
    %cst_13 = arith.constant dense<0.000000e+00> : vector<16x128xf32>
    %22 = tpu.matmul %19, %21, %cst_13 {dimension_numbers = #tpu.dot_dimension_numbers<[1], [0], [0], [1], [0, 0, 1, 1], [], []>} : vector<16x128xbf16>, vector<128x128xbf16>, vector<16x128xf32> -> vector<16x128xf32>
    %23 = vector.extract_strided_slice %10 {offsets = [1, 0], sizes = [1, 128], strides = [1, 1]} : vector<3x128xf32> to vector<1x128xf32>
    %24 = vector.broadcast %23 : vector<1x128xf32> to vector<16x128xf32>
    %25 = arith.addf %22, %24 : vector<16x128xf32>
    %cst_14 = arith.constant 0.000000e+00 : f32
    %26 = vector.broadcast %cst_14 : f32 to vector<16x128xf32>
    %27 = arith.maximumf %25, %26 : vector<16x128xf32>
    %28 = arith.truncf %27 : vector<16x128xf32> to vector<16x128xbf16>
    %c1 = arith.constant 1 : index
    %c0_15 = arith.constant 0 : index
    %c0_16 = arith.constant 0 : index
    %29 = vector.load %arg5[%c1, %c0_15, %c0_16] : memref<2x128x128xbf16, #tpu.memory_space<vmem>>, vector<1x128x128xbf16>
    %30 = vector.shape_cast %29 : vector<1x128x128xbf16> to vector<128x128xbf16>
    %cst_17 = arith.constant dense<0.000000e+00> : vector<16x128xf32>
    %31 = tpu.matmul %28, %30, %cst_17 {dimension_numbers = #tpu.dot_dimension_numbers<[1], [0], [0], [1], [0, 0, 1, 1], [], []>} : vector<16x128xbf16>, vector<128x128xbf16>, vector<16x128xf32> -> vector<16x128xf32>
    %32 = vector.extract_strided_slice %10 {offsets = [2, 0], sizes = [1, 128], strides = [1, 1]} : vector<3x128xf32> to vector<1x128xf32>
    %33 = vector.broadcast %32 : vector<1x128xf32> to vector<16x128xf32>
    %34 = arith.addf %31, %33 : vector<16x128xf32>
    %cst_18 = arith.constant 0.000000e+00 : f32
    %35 = vector.broadcast %cst_18 : f32 to vector<16x128xf32>
    %36 = arith.maximumf %34, %35 : vector<16x128xf32>
    %37 = arith.truncf %36 : vector<16x128xf32> to vector<16x128xbf16>
    %c0_19 = arith.constant 0 : index
    %c0_20 = arith.constant 0 : index
    %38 = vector.load %arg6[%c0_19, %c0_20] : memref<128x128xbf16, #tpu.memory_space<vmem>>, vector<128x128xbf16>
    %cst_21 = arith.constant dense<0.000000e+00> : vector<16x128xf32>
    %39 = tpu.matmul %37, %38, %cst_21 {dimension_numbers = #tpu.dot_dimension_numbers<[1], [0], [0], [1], [0, 0, 1, 1], [], []>} : vector<16x128xbf16>, vector<128x128xbf16>, vector<16x128xf32> -> vector<16x128xf32>
    %c0_22 = arith.constant 0 : index
    %c0_23 = arith.constant 0 : index
    %40 = vector.load %arg7[%c0_22, %c0_23] : memref<1x128xf32, #tpu.memory_space<vmem>>, vector<1x128xf32>
    %41 = vector.broadcast %40 : vector<1x128xf32> to vector<16x128xf32>
    %42 = arith.addf %39, %41 : vector<16x128xf32>
    %c0_24 = arith.constant 0 : index
    %c0_25 = arith.constant 0 : index
    %43 = vector.load %arg9[%c0_24, %c0_25] : memref<16x128xf32, #tpu.memory_space<vmem>>, vector<16x128xf32>
    tpu.vector_store %arg9[%c0_24, %c0_25], %42 {strides = array<i32>} : memref<16x128xf32, #tpu.memory_space<vmem>>, vector<16x128xf32>,
    return
  }
  func.func @transform_0(%arg0: i32) -> (i32, i32) {
    %c0_i32 = arith.constant 0 : i32
    %c0_i32_0 = arith.constant 0 : i32
    return %arg0, %c0_i32 : i32, i32
  }
  func.func @transform_1(%arg0: i32) -> (i32, i32) {
    %c0_i32 = arith.constant 0 : i32
    %c0_i32_0 = arith.constant 0 : i32
    %c0_i32_1 = arith.constant 0 : i32
    return %c0_i32, %c0_i32_0 : i32, i32
  }
  func.func @transform_2(%arg0: i32) -> (i32, i32) {
    %c0_i32 = arith.constant 0 : i32
    %c0_i32_0 = arith.constant 0 : i32
    %c0_i32_1 = arith.constant 0 : i32
    return %c0_i32, %c0_i32_0 : i32, i32
  }
  func.func @transform_3(%arg0: i32) -> (i32, i32) {
    %c0_i32 = arith.constant 0 : i32
    %c0_i32_0 = arith.constant 0 : i32
    %c0_i32_1 = arith.constant 0 : i32
    return %c0_i32, %c0_i32_0 : i32, i32
  }
  func.func @transform_4(%arg0: i32) -> (i32, i32, i32) {
    %c0_i32 = arith.constant 0 : i32
    %c0_i32_0 = arith.constant 0 : i32
    %c0_i32_1 = arith.constant 0 : i32
    %c0_i32_2 = arith.constant 0 : i32
    return %c0_i32, %c0_i32_0, %c0_i32_1 : i32, i32, i32
  }
  func.func @transform_5(%arg0: i32) -> (i32, i32) {
    %c0_i32 = arith.constant 0 : i32
    %c0_i32_0 = arith.constant 0 : i32
    %c0_i32_1 = arith.constant 0 : i32
    return %c0_i32, %c0_i32_0 : i32, i32
  }
  func.func @transform_6(%arg0: i32) -> (i32, i32) {
    %c0_i32 = arith.constant 0 : i32
    %c0_i32_0 = arith.constant 0 : i32
    %c0_i32_1 = arith.constant 0 : i32
    return %c0_i32, %c0_i32_0 : i32, i32
  }
  func.func @transform_7(%arg0: i32) -> (i32, i32) {
    %c0_i32 = arith.constant 0 : i32
    %c0_i32_0 = arith.constant 0 : i32
    return %arg0, %c0_i32 : i32, i32
  }
  func.func @transform_8(%arg0: i32) -> (i32, i32) {
    %c0_i32 = arith.constant 0 : i32
    %c0_i32_0 = arith.constant 0 : i32
    return %arg0, %c0_i32 : i32, i32
  }
}

</mosaic_0001>

<bundles_post_ra>
// kernel: autoencoder_forward.5
= control target key start
LH: loop header
LB: loop body
LE: loop exit
PB: predicated region body
PF: predicated region fallthrough
CT: control target
= control target key end

     0   :  { %v241_v0 = vmov 0.0   ;;  %vm242_vm0 = vmmov 0   ;;  %v22_v2 = vlaneseq  ;;  %vm168_vm1 = vcmask 1040384   ;;  %s304_s2 = inlined_call_operand.vmem [shape: bf16[128,128], index: 2, kind: input, shape index: {}]   ;;  %s305_s0 = inlined_call_operand.vmem [shape: bf16[16,128], index: 0, kind: input, shape index: {}]   ;;  %s306_s1 = inlined_call_operand.vmem [shape: f32[8,128], index: 1, kind: input, shape index: {}]   ;;  %s307_s3 = inlined_call_operand.vmem [shape: bf16[16,128], index: 3, kind: output, shape index: {0}]   ;;  %s308_s4 = inlined_call_operand.vmem [shape: f32[1,8,128], index: 4, kind: output, shape index: {1}]  }
   0x1   :  { %211 = vmatprep.subr.bf16.mxu0 %v241_v0  ;;  %v233_v1 = vld [vmem:[%s304_s2] sm:$0xff]   ;;  %227 = vmatprep.mubr.msk.bf16.mxu0 %vm242_vm0, %v241_v0  ;;  %v234_v3 = vld [vmem:[%s304_s2 + $0x8] sm:$0xff]   ;;  %v235_v5 = vld [vmem:[%s304_s2 + $0x10] sm:$0xff]   ;;  %vm170_vm2 = vcmask 1041408  }
   0x2   :  { %212 = vmatpush3.bf16.msra.mxu0 %v233_v1  ;;  %v23_v4 = vshrl.u32 %v22_v2, 7  ;;  %v236_v7 = vld [vmem:[%s304_s2 + $0x18] sm:$0xff]   ;;  %v17_v8 = vld [vmem:[%s306_s1] sm:$0xff]  ;;  %v238_v18 = vld [vmem:[%s304_s2 + $0x28] sm:$0xff]  }
   0x3   :  { %213 = vmatprep.subr.bf16.mxu0 %v241_v0  ;;  %v194_v9 = vld [vmem:[%s305_s0] sm:$0xff]   ;;  %v239_v21 = vld [vmem:[%s304_s2 + $0x30] sm:$0xff]   ;;  %v240_v24 = vld [vmem:[%s304_s2 + $0x38] sm:$0xff]  }
   0x4   :  { %v24_v6 = vsub.s32 0, %v23_v4  ;;  %v195_v10 = vunpack.c.l.bf16 %v194_v9  ;;  %v196_v11 = vunpack.c.h.bf16 %v194_v9  ;;  %v30_v13 = vsub.s32 1, %v23_v4  ;;  %v237_v14 = vld [vmem:[%s304_s2 + $0x20] sm:$0xff]  }
   0x6   :  { %214 = vmatpush3.bf16.msra.mxu0 %v234_v3  ;;  %v25_v12 = vrot.slane %v17_v8, %v24_v6  ;;  %v31_v17 = vrot.slane %v17_v8, %v30_v13 }
   0x7   :  { %215 = vmatprep.subr.bf16.mxu0 %v241_v0 }
   0x8   :  { %v26_v15 = vmul.f32 %v195_v10, %v25_v12  ;;  %v27_v16 = vmul.f32 %v196_v11, %v25_v12 }
   0xa   :  { %216 = vmatpush3.bf16.msra.mxu0 %v235_v5  ;;  %v32_v19 = vadd.f32 %v31_v17, %v26_v15  ;;  %v33_v20 = vadd.f32 %v31_v17, %v27_v16 }
   0xb   :  { %217 = vmatprep.subr.bf16.mxu0 %v241_v0 }
   0xc   :  { %v34_v22 = vmax.f32 %v32_v19, 0.0  ;;  %v35_v23 = vmax.f32 %v33_v20, 0.0 }
   0xe   :  { %218 = vmatpush3.bf16.msra.mxu0 %v236_v7  ;;  %v36_v25 = vpack.c.bf16 %v35_v23, %v34_v22 }
   0xf   :  { %219 = vmatprep.subr.bf16.mxu0 %v241_v0 }
  0x12   :  { %220 = vmatpush3.bf16.msra.mxu0 %v237_v14 }
  0x13   :  { %221 = vmatprep.subr.bf16.mxu0 %v241_v0 }
  0x16   :  { %222 = vmatpush3.bf16.msra.mxu0 %v238_v18 }
  0x17   :  { %223 = vmatprep.subr.bf16.mxu0 %v241_v0 }
  0x1a   :  { %224 = vmatpush3.bf16.msra.mxu0 %v239_v21 }
  0x1b   :  { %225 = vmatprep.subr.bf16.mxu0 %v241_v0 }
  0x1e   :  { %226 = vmatpush3.bf16.msra.mxu0 %v240_v24 }
  0x21   :  { %228 = vmatmul.mubr.bf16.vlgmr.msra.gmra.mrb[0].mxu0 %v36_v25 }
  0xf4   :  { %v135_v26 = vpop.f32.mrb[0].mxu0 }
  0xf5   :  { %v229_v27 = vpop.f32.mrb[1].mxu0  ;;  %v159_v29 = vmul.f32 %v135_v26, %v135_v26 }
  0xf6   :  { %v138_v28 = vpop.f32.mrb[2].mxu0 }
  0xf7   :  { %v200_v30 = vpack.c.bf16 %v138_v28, %v135_v26  ;;  %v152_v31 = vadd.f32 %v138_v28, %v135_v26  ;;  %v160_v32 = vmul.f32 %v138_v28, %v138_v28  ;;  %v230_v33 = vpop.f32.mrb[3].mxu0 }
  0xf9   :  { %201 = vst [vmem:[%s307_s3] sm:$0xff] %v200_v30   ;;  %v153_v34 = vrot.slane %v152_v31, 4  ;;  %v161_v35 = vadd.f32 %v160_v32, %v159_v29 }
  0xfb   :  { %v154_v36 = vadd.f32 %v153_v34, %v152_v31  ;;  %v162_v37 = vrot.slane %v161_v35, 4 }
  0xfd   :  { %v155_v38 = vrot.slane %v154_v36, 2  ;;  %v163_v39 = vadd.f32 %v162_v37, %v161_v35 }
  0xff   :  { %v156_v40 = vadd.f32 %v155_v38, %v154_v36  ;;  %v164_v41 = vrot.slane %v163_v39, 2 }
 0x101   :  { %v157_v42 = vrot.slane %v156_v40, 1  ;;  %v165_v43 = vadd.f32 %v164_v41, %v163_v39 }
 0x103   :  { %v166_v44 = vrot.slane %v165_v43, 1  ;;  %v158_v45 = vadd.f32 %v157_v42, %v156_v40 }
 0x105   :  { %v167_v46 = vadd.f32 %v166_v44, %v165_v43 }
 0x107   :  { %v169_v47 = vsel %vm168_vm1, %v158_v45, %v167_v46 }
 0x108   :  { %v171_v48 = vsel %vm170_vm2, %v169_v47, 0.0 }
 0x109   :  { %172 = vst [vmem:[%s308_s4] sm:$0xff] %v171_v48 }

// kernel: autoencoder_forward.4
= control target key start
LH: loop header
LB: loop body
LE: loop exit
PB: predicated region body
PF: predicated region fallthrough
CT: control target
= control target key end

     0   :  { %v224_v0 = vmov 0.0   ;;  %vm225_vm0 = vmmov 0   ;;  %vm153_vm1 = vcmask 1040384   ;;  %vm155_vm2 = vcmask 1041408   ;;  %s279_s1 = inlined_call_operand.vmem [shape: bf16[128,128], index: 1, kind: input, shape index: {}]   ;;  %s280_s0 = inlined_call_operand.vmem [shape: bf16[16,128], index: 0, kind: input, shape index: {}]   ;;  %s281_s2 = inlined_call_operand.vmem [shape: bf16[16,128], index: 2, kind: output, shape index: {0}]   ;;  %s282_s3 = inlined_call_operand.vmem [shape: f32[1,8,128], index: 3, kind: output, shape index: {1}]  }
   0x1   :  { %193 = vmatprep.subr.bf16.mxu0 %v224_v0  ;;  %v215_v1 = vld [vmem:[%s279_s1] sm:$0xff]   ;;  %209 = vmatprep.mubr.msk.bf16.mxu0 %vm225_vm0, %v224_v0  ;;  %v216_v2 = vld [vmem:[%s279_s1 + $0x8] sm:$0xff]   ;;  %v217_v3 = vld [vmem:[%s279_s1 + $0x10] sm:$0xff]  }
   0x2   :  { %194 = vmatpush3.bf16.msra.mxu0 %v215_v1  ;;  %v218_v4 = vld [vmem:[%s279_s1 + $0x18] sm:$0xff]   ;;  %v219_v5 = vld [vmem:[%s279_s1 + $0x20] sm:$0xff]   ;;  %v220_v6 = vld [vmem:[%s279_s1 + $0x28] sm:$0xff]  }
   0x3   :  { %195 = vmatprep.subr.bf16.mxu0 %v224_v0  ;;  %v221_v7 = vld [vmem:[%s279_s1 + $0x30] sm:$0xff]   ;;  %v222_v8 = vld [vmem:[%s279_s1 + $0x38] sm:$0xff]   ;;  %v223_v9 = vld [vmem:[%s280_s0] sm:$0xff]  }
   0x6   :  { %196 = vmatpush3.bf16.msra.mxu0 %v216_v2 }
   0x7   :  { %197 = vmatprep.subr.bf16.mxu0 %v224_v0 }
   0xa   :  { %198 = vmatpush3.bf16.msra.mxu0 %v217_v3 }
   0xb   :  { %199 = vmatprep.subr.bf16.mxu0 %v224_v0 }
   0xe   :  { %200 = vmatpush3.bf16.msra.mxu0 %v218_v4 }
   0xf   :  { %201 = vmatprep.subr.bf16.mxu0 %v224_v0 }
  0x12   :  { %202 = vmatpush3.bf16.msra.mxu0 %v219_v5 }
  0x13   :  { %203 = vmatprep.subr.bf16.mxu0 %v224_v0 }
  0x16   :  { %204 = vmatpush3.bf16.msra.mxu0 %v220_v6 }
  0x17   :  { %205 = vmatprep.subr.bf16.mxu0 %v224_v0 }
  0x1a   :  { %206 = vmatpush3.bf16.msra.mxu0 %v221_v7 }
  0x1b   :  { %207 = vmatprep.subr.bf16.mxu0 %v224_v0 }
  0x1e   :  { %208 = vmatpush3.bf16.msra.mxu0 %v222_v8 }
  0x21   :  { %210 = vmatmul.mubr.bf16.vlgmr.msra.gmra.mrb[0].mxu0 %v223_v9 }
  0xf4   :  { %v120_v10 = vpop.f32.mrb[0].mxu0 }
  0xf5   :  { %v211_v11 = vpop.f32.mrb[1].mxu0  ;;  %v144_v13 = vmul.f32 %v120_v10, %v120_v10 }
  0xf6   :  { %v123_v12 = vpop.f32.mrb[2].mxu0 }
  0xf7   :  { %v182_v14 = vpack.c.bf16 %v123_v12, %v120_v10  ;;  %v137_v15 = vadd.f32 %v123_v12, %v120_v10  ;;  %v145_v16 = vmul.f32 %v123_v12, %v123_v12  ;;  %v212_v17 = vpop.f32.mrb[3].mxu0 }
  0xf9   :  { %183 = vst [vmem:[%s281_s2] sm:$0xff] %v182_v14   ;;  %v138_v18 = vrot.slane %v137_v15, 4  ;;  %v146_v19 = vadd.f32 %v145_v16, %v144_v13 }
  0xfb   :  { %v139_v20 = vadd.f32 %v138_v18, %v137_v15  ;;  %v147_v21 = vrot.slane %v146_v19, 4 }
  0xfd   :  { %v140_v22 = vrot.slane %v139_v20, 2  ;;  %v148_v23 = vadd.f32 %v147_v21, %v146_v19 }
  0xff   :  { %v141_v24 = vadd.f32 %v140_v22, %v139_v20  ;;  %v149_v25 = vrot.slane %v148_v23, 2 }
 0x101   :  { %v142_v26 = vrot.slane %v141_v24, 1  ;;  %v150_v27 = vadd.f32 %v149_v25, %v148_v23 }
 0x103   :  { %v151_v28 = vrot.slane %v150_v27, 1  ;;  %v143_v29 = vadd.f32 %v142_v26, %v141_v24 }
 0x105   :  { %v152_v30 = vadd.f32 %v151_v28, %v150_v27 }
 0x107   :  { %v154_v31 = vsel %vm153_vm1, %v143_v29, %v152_v30 }
 0x108   :  { %v156_v32 = vsel %vm155_vm2, %v154_v31, 0.0 }
 0x109   :  { %157 = vst [vmem:[%s282_s3] sm:$0xff] %v156_v32 }

// kernel: autoencoder_forward.7
= control target key start
LH: loop header
LB: loop body
LE: loop exit
PB: predicated region body
PF: predicated region fallthrough
CT: control target
= control target key end

     0   :  { %v34_v0 = vlaneseq  ;;  %v712_v1 = vmov 0.0   ;;  %vm713_vm0 = vmmov 0   ;;  %s932_s2 = inlined_call_operand.vmem [shape: bf16[128,128], index: 2, kind: input, shape index: {}]   ;;  %s933_s0 = inlined_call_operand.vmem [shape: bf16[16,128], index: 0, kind: input, shape index: {}]   ;;  %s934_s1 = inlined_call_operand.vmem [shape: f32[8,128], index: 1, kind: input, shape index: {}]   ;;  %s935_s4 = inlined_call_operand.vmem [shape: bf16[2,128,128], index: 4, kind: input, shape index: {}]   ;;  %s936_s7 = inlined_call_operand.vmem [shape: f32[16,128], index: 7, kind: output, shape index: {0}]   ;;  %s937_s3 = inlined_call_operand.vmem [shape: f32[3,128], index: 3, kind: input, shape index: {}]   ;;  %s938_s5 = inlined_call_operand.vmem [shape: bf16[128,128], index: 5, kind: input, shape index: {}]   ;;  %s939_s6 = inlined_call_operand.vmem [shape: f32[1,128], index: 6, kind: input, shape index: {}]   ;;  %s940_s8 = inlined_call_operand.vmem [shape: f32[16,128], index: 8, kind: output, shape index: {1}]  }
   0x1   :  { %598 = vmatprep.subr.bf16.mxu0 %v712_v1  ;;  %v680_v2 = vld [vmem:[%s932_s2] sm:$0xff]   ;;  %614 = vmatprep.mubr.msk.bf16.mxu0 %vm713_vm0, %v712_v1  ;;  %v681_v4 = vld [vmem:[%s932_s2 + $0x8] sm:$0xff]   ;;  %v682_v7 = vld [vmem:[%s932_s2 + $0x10] sm:$0xff]  }
   0x2   :  { %v765_v3 = vshrl.u32 %v34_v0, 7  ;;  %618 = vmatprep.subr.bf16.mxu1 %v712_v1  ;;  %634 = vmatprep.mubr.msk.bf16.mxu1 %vm713_vm0, %v712_v1  ;;  %v29_v8 = vld [vmem:[%s934_s1] sm:$0xff]  ;;  %v683_v15 = vld [vmem:[%s932_s2 + $0x18] sm:$0xff]   ;;  %v689_v18 = vld [vmem:[%s935_s4 + $0x8] sm:$0xff]  }
   0x3   :  { %599 = vmatpush3.bf16.msra.mxu0 %v680_v2  ;;  %v559_v9 = vld [vmem:[%s933_s0] sm:$0xff]   ;;  %v690_v22 = vld [vmem:[%s935_s4 + $0x10] sm:$0xff]   ;;  %v685_v23 = vld [vmem:[%s932_s2 + $0x28] sm:$0xff]  }
   0x4   :  { %600 = vmatprep.subr.bf16.mxu0 %v712_v1  ;;  %v36_v5 = vsub.s32 0, %v765_v3  ;;  %v42_v6 = vsub.s32 1, %v765_v3  ;;  %v560_v10 = vunpack.c.l.bf16 %v559_v9  ;;  %v561_v11 = vunpack.c.h.bf16 %v559_v9  ;;  %v688_v14 = vld [vmem:[%s935_s4] sm:$0xff]   ;;  %v691_v24 = vld [vmem:[%s935_s4 + $0x18] sm:$0xff]   ;;  %v686_v25 = vld [vmem:[%s932_s2 + $0x30] sm:$0xff]  }
   0x5   :  { %619 = vmatpush3.bf16.msra.mxu1 %v688_v14  ;;  %v684_v21 = vld [vmem:[%s932_s2 + $0x20] sm:$0xff]   ;;  %v687_v27 = vld [vmem:[%s932_s2 + $0x38] sm:$0xff]   ;;  %v693_v28 = vld [vmem:[%s935_s4 + $0x28] sm:$0xff]  }
   0x6   :  { %v37_v12 = vrot.slane %v29_v8, %v36_v5  ;;  %v43_v13 = vrot.slane %v29_v8, %v42_v6  ;;  %620 = vmatprep.subr.bf16.mxu1 %v712_v1  ;;  %v692_v26 = vld [vmem:[%s935_s4 + $0x20] sm:$0xff]   ;;  %v694_v30 = vld [vmem:[%s935_s4 + $0x30] sm:$0xff]   ;;  %v695_v31 = vld [vmem:[%s935_s4 + $0x38] sm:$0xff]  }
   0x7   :  { %601 = vmatpush3.bf16.msra.mxu0 %v681_v4  ;;  %v696_v32 = vld [vmem:[%s935_s4 + $0x40] sm:$0xff]   ;;  %v697_v33 = vld [vmem:[%s935_s4 + $0x48] sm:$0xff]   ;;  %v698_v34 = vld [vmem:[%s935_s4 + $0x50] sm:$0xff]  }
   0x8   :  { %602 = vmatprep.subr.bf16.mxu0 %v712_v1  ;;  %v38_v16 = vmul.f32 %v560_v10, %v37_v12  ;;  %v39_v17 = vmul.f32 %v561_v11, %v37_v12  ;;  %v699_v35 = vld [vmem:[%s935_s4 + $0x58] sm:$0xff]   ;;  %v700_v36 = vld [vmem:[%s935_s4 + $0x60] sm:$0xff]   ;;  %v701_v37 = vld [vmem:[%s935_s4 + $0x68] sm:$0xff]  }
   0x9   :  { %621 = vmatpush3.bf16.msra.mxu1 %v689_v18  ;;  %v48_v38 = vld [vmem:[%s937_s3] sm:$0x7]  ;;  %v702_v49 = vld [vmem:[%s935_s4 + $0x70] sm:$0xff]   ;;  %v703_v50 = vld [vmem:[%s935_s4 + $0x78] sm:$0xff]  }
   0xa   :  { %v44_v19 = vadd.f32 %v43_v13, %v38_v16  ;;  %v45_v20 = vadd.f32 %v43_v13, %v39_v17  ;;  %622 = vmatprep.subr.bf16.mxu1 %v712_v1  ;;  %v69_v39 = vrot.slane %v48_v38, %v36_v5  ;;  %v704_v51 = vld [vmem:[%s938_s5] sm:$0xff]   ;;  %v705_v52 = vld [vmem:[%s938_s5 + $0x8] sm:$0xff]   ;;  %v706_v53 = vld [vmem:[%s938_s5 + $0x10] sm:$0xff]   ;;  %v181_v57 = vrot.slane %v48_v38, %v42_v6 }
   0xb   :  { %603 = vmatpush3.bf16.msra.mxu0 %v682_v7  ;;  %v707_v54 = vld [vmem:[%s938_s5 + $0x18] sm:$0xff]   ;;  %v708_v55 = vld [vmem:[%s938_s5 + $0x20] sm:$0xff]   ;;  %v709_v56 = vld [vmem:[%s938_s5 + $0x28] sm:$0xff]   ;;  %v293_v7 = vsub.s32 2, %v765_v3 }
   0xc   :  { %604 = vmatprep.subr.bf16.mxu0 %v712_v1  ;;  %46 = vst [vmem:[%s936_s7] sm:$0xff] %v44_v19  ;;  %47 = vst [vmem:[%s936_s7 + $0x8] sm:$0xff] %v45_v20  ;;  %v49_v29 = vpack.c.bf16 %v45_v20, %v44_v19  ;;  %v710_v5 = vld [vmem:[%s938_s5 + $0x30] sm:$0xff]   ;;  %v711_v6 = vld [vmem:[%s938_s5 + $0x38] sm:$0xff]  }
   0xd   :  { %623 = vmatpush3.bf16.msra.mxu1 %v690_v22  ;;  %v294_v8 = vrot.slane %v48_v38, %v293_v7 }
   0xe   :  { %624 = vmatprep.subr.bf16.mxu1 %v712_v1 }
   0xf   :  { %605 = vmatpush3.bf16.msra.mxu0 %v683_v15 }
  0x10   :  { %606 = vmatprep.subr.bf16.mxu0 %v712_v1 }
  0x11   :  { %625 = vmatpush3.bf16.msra.mxu1 %v691_v24 }
  0x12   :  { %626 = vmatprep.subr.bf16.mxu1 %v712_v1 }
  0x13   :  { %607 = vmatpush3.bf16.msra.mxu0 %v684_v21 }
  0x14   :  { %608 = vmatprep.subr.bf16.mxu0 %v712_v1 }
  0x15   :  { %627 = vmatpush3.bf16.msra.mxu1 %v692_v26 }
  0x16   :  { %628 = vmatprep.subr.bf16.mxu1 %v712_v1 }
  0x17   :  { %609 = vmatpush3.bf16.msra.mxu0 %v685_v23 }
  0x18   :  { %610 = vmatprep.subr.bf16.mxu0 %v712_v1 }
  0x19   :  { %629 = vmatpush3.bf16.msra.mxu1 %v693_v28 }
  0x1a   :  { %630 = vmatprep.subr.bf16.mxu1 %v712_v1 }
  0x1b   :  { %611 = vmatpush3.bf16.msra.mxu0 %v686_v25 }
  0x1c   :  { %612 = vmatprep.subr.bf16.mxu0 %v712_v1 }
  0x1d   :  { %631 = vmatpush3.bf16.msra.mxu1 %v694_v30 }
  0x1e   :  { %632 = vmatprep.subr.bf16.mxu1 %v712_v1 }
  0x1f   :  { %613 = vmatpush3.bf16.msra.mxu0 %v687_v27 }
  0x20   :  { %638 = vmatprep.subr.bf16.mxu0 %v712_v1 }
  0x21   :  { %633 = vmatpush3.bf16.msra.mxu1 %v695_v31 }
  0x22   :  { %615 = vmatmul.mubr.bf16.vlgmr.msra.gmra.mrb[0].mxu0 %v49_v29  ;;  %658 = vmatprep.subr.bf16.mxu1 %v712_v1 }
  0x23   :  { %654 = vmatprep.mubr.msk.bf16.mxu0 %vm713_vm0, %v712_v1  ;;  %639 = vmatpush3.bf16.msra.mxu0 %v696_v32 }
  0x24   :  { %640 = vmatprep.subr.bf16.mxu0 %v712_v1 }
  0x27   :  { %641 = vmatpush3.bf16.msra.mxu0 %v697_v33 }
  0x28   :  { %642 = vmatprep.subr.bf16.mxu0 %v712_v1 }
  0x2b   :  { %643 = vmatpush3.bf16.msra.mxu0 %v698_v34 }
  0x2c   :  { %644 = vmatprep.subr.bf16.mxu0 %v712_v1 }
  0x2f   :  { %645 = vmatpush3.bf16.msra.mxu0 %v699_v35 }
  0x30   :  { %646 = vmatprep.subr.bf16.mxu0 %v712_v1 }
  0x33   :  { %647 = vmatpush3.bf16.msra.mxu0 %v700_v36 }
  0x34   :  { %648 = vmatprep.subr.bf16.mxu0 %v712_v1 }
  0x37   :  { %649 = vmatpush3.bf16.msra.mxu0 %v701_v37 }
  0x38   :  { %650 = vmatprep.subr.bf16.mxu0 %v712_v1 }
  0x3b   :  { %651 = vmatpush3.bf16.msra.mxu0 %v702_v49 }
  0x3c   :  { %652 = vmatprep.subr.bf16.mxu0 %v712_v1 }
  0x3f   :  { %653 = vmatpush3.bf16.msra.mxu0 %v703_v50 }
  0xf5   :  { %v152_v40 = vpop.f32.mrb[0].mxu0 }
  0xf6   :  { %v153_v41 = vadd.f32 %v152_v40, %v69_v39  ;;  %v616_v42 = vpop.f32.mrb[1].mxu0 }
  0xf7   :  { %v155_v43 = vpop.f32.mrb[2].mxu0 }
  0xf8   :  { %v156_v44 = vadd.f32 %v155_v43, %v69_v39  ;;  %v617_v45 = vpop.f32.mrb[3].mxu0  ;;  %v159_v46 = vmax.f32 %v153_v41, 0.0 }
  0xfa   :  { %v160_v47 = vmax.f32 %v156_v44, 0.0 }
  0xfc   :  { %v161_v48 = vpack.c.bf16 %v160_v47, %v159_v46 }
  0xfe   :  { %635 = vmatmul.mubr.bf16.vlgmr.msra.gmra.mrb[0].mxu1 %v161_v48 }
  0xff   :  { %674 = vmatprep.mubr.msk.bf16.mxu1 %vm713_vm0, %v712_v1  ;;  %659 = vmatpush3.bf16.msra.mxu1 %v704_v51 }
 0x100   :  { %660 = vmatprep.subr.bf16.mxu1 %v712_v1 }
 0x103   :  { %661 = vmatpush3.bf16.msra.mxu1 %v705_v52 }
 0x104   :  { %662 = vmatprep.subr.bf16.mxu1 %v712_v1 }
 0x107   :  { %663 = vmatpush3.bf16.msra.mxu1 %v706_v53 }
 0x108   :  { %664 = vmatprep.subr.bf16.mxu1 %v712_v1 }
 0x10b   :  { %665 = vmatpush3.bf16.msra.mxu1 %v707_v54 }
 0x10c   :  { %666 = vmatprep.subr.bf16.mxu1 %v712_v1 }
 0x10f   :  { %667 = vmatpush3.bf16.msra.mxu1 %v708_v55 }
 0x110   :  { %668 = vmatprep.subr.bf16.mxu1 %v712_v1 }
 0x113   :  { %669 = vmatpush3.bf16.msra.mxu1 %v709_v56 }
 0x114   :  { %670 = vmatprep.subr.bf16.mxu1 %v712_v1 }
 0x117   :  { %671 = vmatpush3.bf16.msra.mxu1 %v710_v5 }
 0x118   :  { %672 = vmatprep.subr.bf16.mxu1 %v712_v1  ;;  %v549_v1 = vld [vmem:[%s939_s6] ss:$0 sm:$0xff] }
 0x11b   :  { %673 = vmatpush3.bf16.msra.mxu1 %v711_v6 }
 0x1d1   :  { %v264_v58 = vpop.f32.mrb[0].mxu1 }
 0x1d2   :  { %v265_v59 = vadd.f32 %v264_v58, %v181_v57  ;;  %v636_v60 = vpop.f32.mrb[1].mxu1 }
 0x1d3   :  { %v267_v61 = vpop.f32.mrb[2].mxu1 }
 0x1d4   :  { %v268_v62 = vadd.f32 %v267_v61, %v181_v57  ;;  %v637_v63 = vpop.f32.mrb[3].mxu1  ;;  %v271_v0 = vmax.f32 %v265_v59, 0.0 }
 0x1d6   :  { %v272_v2 = vmax.f32 %v268_v62, 0.0 }
 0x1d8   :  { %v273_v4 = vpack.c.bf16 %v272_v2, %v271_v0 }
 0x1da   :  { %655 = vmatmul.mubr.bf16.vlgmr.msra.gmra.mrb[4].mxu0 %v273_v4 }
 0x2ad   :  { %v377_v9 = vpop.f32.mrb[4].mxu0 }
 0x2ae   :  { %v378_v10 = vadd.f32 %v377_v9, %v294_v8  ;;  %v656_v11 = vpop.f32.mrb[5].mxu0 }
 0x2af   :  { %v380_v12 = vpop.f32.mrb[6].mxu0 }
 0x2b0   :  { %v381_v13 = vadd.f32 %v380_v12, %v294_v8  ;;  %v657_v14 = vpop.f32.mrb[7].mxu0  ;;  %v384_v15 = vmax.f32 %v378_v10, 0.0 }
 0x2b2   :  { %v385_v16 = vmax.f32 %v381_v13, 0.0 }
 0x2b4   :  { %v386_v17 = vpack.c.bf16 %v385_v16, %v384_v15 }
 0x2b6   :  { %675 = vmatmul.mubr.bf16.vlgmr.msra.gmra.mrb[4].mxu1 %v386_v17 }
 0x389   :  { %v492_v18 = vpop.f32.mrb[4].mxu1 }
 0x38a   :  { %v493_v19 = vadd.f32 %v549_v1, %v492_v18  ;;  %v676_v20 = vpop.f32.mrb[5].mxu1 }
 0x38b   :  { %v495_v21 = vpop.f32.mrb[6].mxu1 }
 0x38c   :  { %499 = vst [vmem:[%s940_s8] sm:$0xff] %v493_v19  ;;  %v496_v3 = vadd.f32 %v549_v1, %v495_v21  ;;  %v677_v22 = vpop.f32.mrb[7].mxu1 }
 0x38e   :  { %500 = vst [vmem:[%s940_s8 + $0x8] sm:$0xff] %v496_v3 }

</bundles_post_ra>
